<compile_context>
chip_gen: v7x
topology: tpu7x:2x2x1
jax: 0.10.0
libtpu: 0.0.40
codegen_flags: <defaults>
</compile_context>

<pallas_src>
import jax
import jax.numpy as jnp
from jax.experimental import pallas as pl
from jax.experimental.pallas import tpu as pltpu

DEFAULT_LI_ADAPTIVE_ALPHA_MEAN = 3.0
DEFAULT_LI_ADAPTIVE_ALPHA_STD = 0.1
DEFAULT_LI_ALPHA = 0.9


def _round_up(x, m):
    return ((x + m - 1) // m) * m


def _pad_to(arr, shape):
    pads = [(0, s - d) for d, s in zip(arr.shape, shape)]
    if all(p == (0, 0) for p in pads):
        return arr
    return jnp.pad(arr, pads)


def _pick_tiles(M, K, N, *, max_tm=256, max_tn=512, max_tk=512):
    """Generation-friendly tiles: as large as the padded problem allows, capped
    so the double-buffered footprint stays far under v7x's 64 MiB VMEM."""
    tm = min(max_tm, _round_up(M, 8))
    tn = min(max_tn, _round_up(N, 128))
    tk = min(max_tk, _round_up(K, 128))
    return tm, tn, tk


def _vmem_limit(block_bytes):
    # Double-buffered pipeline footprint + headroom, clamped to a value that is
    # safe on every generation (v7x physical VMEM = 64 MiB).
    need = 2 * block_bytes + (8 << 20)
    return int(min(max(need, 32 << 20), 56 << 20))


# ---------------------------------------------------------------------------
# Single-step kernel (LICell.forward): tiled (M, N, K) grid, K innermost.
# The matmul accumulates directly into the resident f32 output tile; the
# u / (1 - alpha) blend happens in-place on the last K step.
# ---------------------------------------------------------------------------
def _li_step_kernel(x_ref, w_ref, u_ref, oma_ref, out_ref):
    k = pl.program_id(2)

    @pl.when(k == 0)
    def _():
        out_ref[...] = jnp.zeros_like(out_ref)

    out_ref[...] += jnp.dot(x_ref[...], w_ref[...],
                            preferred_element_type=jnp.float32)

    @pl.when(k == pl.num_programs(2) - 1)
    def _():
        u = u_ref[...]                         # f32 (tm, tn)
        oma = oma_ref[...]                     # f32 (1, tn) -> broadcast
        out_ref[...] = u + (out_ref[...] - u) * oma


def li_cell_forward(x, w_t, u, alpha, *, adaptive_alpha=False,
                    matmul_dtype=jnp.float32):
    """x: [B, in], w_t: [in, out] (= W.T), u: [B, out], alpha: [out] -> [B, out]."""
    B, K = x.shape
    Kw, N = w_t.shape
    assert Kw == K and u.shape == (B, N) and alpha.shape == (N,)

    a = jax.nn.sigmoid(alpha) if adaptive_alpha else alpha
    oma = (1.0 - a).astype(jnp.float32).reshape(1, N)

    tm, tn, tk = _pick_tiles(B, K, N)
    Bp, Kp, Np = _round_up(B, tm), _round_up(K, tk), _round_up(N, tn)

    x_p = _pad_to(x, (Bp, Kp)).astype(matmul_dtype)
    w_p = _pad_to(w_t, (Kp, Np)).astype(matmul_dtype)
    u_p = _pad_to(u.astype(jnp.float32), (Bp, Np))
    oma_p = _pad_to(oma, (1, Np))

    itemsize = jnp.dtype(matmul_dtype).itemsize
    block_bytes = (tm * tk + tk * tn) * itemsize + 2 * (tm * tn * 4) + tn * 4
    grid = (Bp // tm, Np // tn, Kp // tk)

    cost = pl.CostEstimate(
        flops=2 * Bp * Kp * Np + 3 * Bp * Np,
        transcendentals=0,
        bytes_accessed=(x_p.size * itemsize + w_p.size * itemsize
                        + u_p.size * 4 + Bp * Np * 4 + oma_p.size * 4),
    )

    out_p = pl.pallas_call(
        _li_step_kernel,
        out_shape=jax.ShapeDtypeStruct((Bp, Np), jnp.float32),
        grid_spec=pltpu.PrefetchScalarGridSpec(
            num_scalar_prefetch=0,
            grid=grid,
            in_specs=[
                pl.BlockSpec((tm, tk), lambda i, j, k: (i, k)),   # x
                pl.BlockSpec((tk, tn), lambda i, j, k: (k, j)),   # W^T
                pl.BlockSpec((tm, tn), lambda i, j, k: (i, j)),   # u
                pl.BlockSpec((1, tn), lambda i, j, k: (0, j)),    # 1 - alpha
            ],
            out_specs=pl.BlockSpec((tm, tn), lambda i, j, k: (i, j)),
        ),
        compiler_params=pltpu.CompilerParams(
            dimension_semantics=("parallel", "parallel", "arbitrary"),
            vmem_limit_bytes=_vmem_limit(block_bytes),
        ),
        cost_estimate=cost,
        input_output_aliases={2: 0},   # reuse the (padded) u buffer for u_new
    )(x_p, w_p, u_p, oma_p)

    return out_p[:B, :N].astype(u.dtype)


# ---------------------------------------------------------------------------
# Sequence path: (a) one big tiled GEMM over (T*B, K) x (K, N), then
# (b) an elementwise leaky-integrator scan with T innermost / state resident.
# ---------------------------------------------------------------------------
def _matmul_kernel(x_ref, w_ref, out_ref):
    k = pl.program_id(2)

    @pl.when(k == 0)
    def _():
        out_ref[...] = jnp.zeros_like(out_ref)

    out_ref[...] += jnp.dot(x_ref[...], w_ref[...],
                            preferred_element_type=jnp.float32)


def _tiled_matmul(x, w, *, matmul_dtype):
    """[M, K] @ [K, N] -> padded [Mp, Np] f32 (caller slices)."""
    M, K = x.shape
    _, N = w.shape
    tm, tn, tk = _pick_tiles(M, K, N)
    Mp, Kp, Np = _round_up(M, tm), _round_up(K, tk), _round_up(N, tn)
    x_p = _pad_to(x, (Mp, Kp)).astype(matmul_dtype)
    w_p = _pad_to(w, (Kp, Np)).astype(matmul_dtype)

    itemsize = jnp.dtype(matmul_dtype).itemsize
    block_bytes = (tm * tk + tk * tn) * itemsize + tm * tn * 4
    cost = pl.CostEstimate(
        flops=2 * Mp * Kp * Np, transcendentals=0,
        bytes_accessed=x_p.size * itemsize + w_p.size * itemsize + Mp * Np * 4)

    out_p = pl.pallas_call(
        _matmul_kernel,
        out_shape=jax.ShapeDtypeStruct((Mp, Np), jnp.float32),
        grid_spec=pltpu.PrefetchScalarGridSpec(
            num_scalar_prefetch=0,
            grid=(Mp // tm, Np // tn, Kp // tk),
            in_specs=[
                pl.BlockSpec((tm, tk), lambda i, j, k: (i, k)),
                pl.BlockSpec((tk, tn), lambda i, j, k: (k, j)),
            ],
            out_specs=pl.BlockSpec((tm, tn), lambda i, j, k: (i, j)),
        ),
        compiler_params=pltpu.CompilerParams(
            dimension_semantics=("parallel", "parallel", "arbitrary"),
            vmem_limit_bytes=_vmem_limit(block_bytes),
        ),
        cost_estimate=cost,
    )(x_p, w_p)
    return out_p, Np


def _li_scan_kernel(s_ref, u0_ref, oma_ref, out_ref):
    t = pl.program_id(2)

    @pl.when(t == 0)
    def _():
        out_ref[...] = u0_ref[...]      # load initial state into resident tile

    u = out_ref[...]
    out_ref[...] = u + (s_ref[0] - u) * oma_ref[...]


def li_cell_forward_seq(x_seq, w_t, u0, alpha, *, adaptive_alpha=False,
                        matmul_dtype=jnp.float32):
    """x_seq: [T, B, in], u0: [B, out] -> final membrane state u_T: [B, out]."""
    T, B, K = x_seq.shape
    Kw, N = w_t.shape
    assert Kw == K and u0.shape == (B, N) and alpha.shape == (N,)

    a = jax.nn.sigmoid(alpha) if adaptive_alpha else alpha
    oma = (1.0 - a).astype(jnp.float32).reshape(1, N)

    # (a) one batched GEMM over all timesteps: M = T*B (full MXU utilization).
    s_p, Np = _tiled_matmul(x_seq.reshape(T * B, K), w_t,
                            matmul_dtype=matmul_dtype)
    s_seq = s_p[:T * B, :].reshape(T, B, Np)

    # (b) memory-bound elementwise scan: T innermost "arbitrary", state resident.
    tm = min(256, _round_up(B, 8))
    tn = min(512, Np)
    Bp = _round_up(B, tm)
    s_seq = _pad_to(s_seq, (T, Bp, Np))
    u_p = _pad_to(u0.astype(jnp.float32), (Bp, Np))
    oma_p = _pad_to(oma, (1, Np))

    block_bytes = 3 * (tm * tn * 4) + tn * 4
    out_p = pl.pallas_call(
        _li_scan_kernel,
        out_shape=jax.ShapeDtypeStruct((Bp, Np), jnp.float32),
        grid_spec=pltpu.PrefetchScalarGridSpec(
            num_scalar_prefetch=0,
            grid=(Bp // tm, Np // tn, T),
            in_specs=[
                pl.BlockSpec((1, tm, tn), lambda i, j, t: (t, i, j)),  # s_t streamed
                pl.BlockSpec((tm, tn), lambda i, j, t: (i, j)),        # u0 (t == 0)
                pl.BlockSpec((1, tn), lambda i, j, t: (0, j)),         # 1 - alpha
            ],
            out_specs=pl.BlockSpec((tm, tn), lambda i, j, t: (i, j)),  # state carrier
        ),
        compiler_params=pltpu.CompilerParams(
            dimension_semantics=("parallel", "parallel", "arbitrary"),
            vmem_limit_bytes=_vmem_limit(block_bytes),
        ),
    )(s_seq, u_p, oma_p)

    return out_p[:B, :N].astype(u0.dtype)


# ---------------------------------------------------------------------------
# Parameter init mirroring LICell.__init__ (bias=False).
# ---------------------------------------------------------------------------
def init_li_cell_params(key, input_size, layer_size,
                        alpha=DEFAULT_LI_ALPHA,
                        adaptive_alpha=False,
                        adaptive_alpha_mean=DEFAULT_LI_ADAPTIVE_ALPHA_MEAN,
                        adaptive_alpha_std=DEFAULT_LI_ADAPTIVE_ALPHA_STD):
    k_w, k_a = jax.random.split(key)
    bound = jnp.sqrt(6.0 / (input_size + layer_size))   # xavier_uniform_
    w = jax.random.uniform(k_w, (layer_size, input_size),
                           minval=-bound, maxval=bound, dtype=jnp.float32)
    if adaptive_alpha:
        alpha_param = (adaptive_alpha_mean
                       + adaptive_alpha_std
                       * jax.random.normal(k_a, (layer_size,), dtype=jnp.float32))
    else:
        alpha_param = alpha * jnp.ones((layer_size,), dtype=jnp.float32)
    # Store W pre-transposed for the kernel: [input_size, layer_size]
    return w.T, alpha_param


if __name__ == "__main__":
    key = jax.random.PRNGKey(0)
    k_params, k_x, k_u, k_xs, k_p2, k_x2, k_u2 = jax.random.split(key, 7)

    batch = 2
    input_size = 16
    layer_size = 32
    seq_len = 8
    adaptive_alpha = False  # default LICell config

    w_t, alpha_param = init_li_cell_params(k_params, input_size, layer_size,
                                           adaptive_alpha=adaptive_alpha)
    x = jax.random.normal(k_x, (batch, input_size), dtype=jnp.float32)
    u = jax.random.normal(k_u, (batch, layer_size), dtype=jnp.float32)

    a = jax.nn.sigmoid(alpha_param) if adaptive_alpha else alpha_param
    hi = jax.lax.Precision.HIGHEST

    # --- single step (small) ---
    u_new = jax.block_until_ready(
        li_cell_forward(x, w_t, u, alpha_param, adaptive_alpha=adaptive_alpha))
    in_sum_ref = jnp.dot(x, w_t, precision=hi)
    u_ref = u * a[None, :] + in_sum_ref * (1.0 - a[None, :])
    assert jnp.allclose(u_new, u_ref, atol=1e-2, rtol=1e-2), "step mismatch"

    # --- single step (multi-tile grid: exercises K accumulation + N tiling) ---
    B2, K2, N2 = 16, 1024, 1024
    w_t2, alpha2 = init_li_cell_params(k_p2, K2, N2,
                                       adaptive_alpha=adaptive_alpha)
    x2 = jax.random.normal(k_x2, (B2, K2), dtype=jnp.float32)
    u2 = jax.random.normal(k_u2, (B2, N2), dtype=jnp.float32)
    a2 = jax.nn.sigmoid(alpha2) if adaptive_alpha else alpha2
    u2_new = jax.block_until_ready(
        li_cell_forward(x2, w_t2, u2, alpha2, adaptive_alpha=adaptive_alpha))
    u2_ref = u2 * a2[None, :] + jnp.dot(x2, w_t2, precision=hi) * (1.0 - a2[None, :])
    assert jnp.allclose(u2_new, u2_ref, atol=1e-2, rtol=1e-2), "tiled step mismatch"

    # --- fused timestep loop (batched GEMM + elementwise scan) ---
    x_seq = jax.random.normal(k_xs, (seq_len, batch, input_size), dtype=jnp.float32)
    u_T = jax.block_until_ready(
        li_cell_forward_seq(x_seq, w_t, u, alpha_param,
                            adaptive_alpha=adaptive_alpha))
    u_ref_t = u
    for t in range(seq_len):
        s = jnp.dot(x_seq[t], w_t, precision=hi)
        u_ref_t = u_ref_t * a[None, :] + s * (1.0 - a[None, :])
    assert jnp.allclose(u_T, u_ref_t, atol=2e-2, rtol=2e-2), "seq mismatch"

    print("KERNEL_OK")
</pallas_src>

<mosaic_0001>
module attributes {stable_mosaic.version = 11 : i64} {
  func.func @_li_step_kernel(%arg0: i32, %arg1: i32, %arg2: i32, %arg3: memref<8x128xf32, #tpu.memory_space<vmem>>, %arg4: memref<128x128xf32, #tpu.memory_space<vmem>>, %arg5: memref<8x128xf32, #tpu.memory_space<vmem>>, %arg6: memref<1x128xf32, #tpu.memory_space<vmem>>, %arg7: memref<8x128xf32, #tpu.memory_space<vmem>>) attributes {dimension_semantics = [#tpu.dimension_semantics<parallel>, #tpu.dimension_semantics<parallel>, #tpu.dimension_semantics<arbitrary>], iteration_bounds = array<i64: 1, 1, 1>, scalar_prefetch = 0 : i64, scratch_operands = 0 : i64, tpu.core_type = #tpu.core_type<tc>, window_params = [{transform_indices = @transform_0, window_bounds = array<i64: 8, 128>}, {transform_indices = @transform_1, window_bounds = array<i64: 128, 128>}, {transform_indices = @transform_2, window_bounds = array<i64: 8, 128>}, {transform_indices = @transform_3, window_bounds = array<i64: 1, 128>}, {transform_indices = @transform_4, window_bounds = array<i64: 8, 128>}]} {
    %c0_i32 = arith.constant 0 : i32
    %0 = arith.cmpi eq, %arg2, %c0_i32 : i32
    %1 = arith.extui %0 : i1 to i32
    %c0_i32_0 = arith.constant 0 : i32
    %2 = arith.cmpi ne, %1, %c0_i32_0 : i32
    scf.if %2 {
      %cst_10 = arith.constant 0.000000e+00 : f32
      %12 = vector.broadcast %cst_10 : f32 to vector<8x128xf32>
      %c0_11 = arith.constant 0 : index
      %c0_12 = arith.constant 0 : index
      %13 = vector.load %arg7[%c0_11, %c0_12] : memref<8x128xf32, #tpu.memory_space<vmem>>, vector<8x128xf32>
      tpu.vector_store %arg7[%c0_11, %c0_12], %12 {strides = array<i32>} : memref<8x128xf32, #tpu.memory_space<vmem>>, vector<8x128xf32>,
    } else {
    }
    %c0 = arith.constant 0 : index
    %c0_1 = arith.constant 0 : index
    %3 = vector.load %arg7[%c0, %c0_1] : memref<8x128xf32, #tpu.memory_space<vmem>>, vector<8x128xf32>
    %c0_2 = arith.constant 0 : index
    %c0_3 = arith.constant 0 : index
    %4 = vector.load %arg3[%c0_2, %c0_3] : memref<8x128xf32, #tpu.memory_space<vmem>>, vector<8x128xf32>
    %c0_4 = arith.constant 0 : index
    %c0_5 = arith.constant 0 : index
    %5 = vector.load %arg4[%c0_4, %c0_5] : memref<128x128xf32, #tpu.memory_space<vmem>>, vector<128x128xf32>
    %cst = arith.constant dense<0.000000e+00> : vector<8x128xf32>
    %6 = tpu.matmul %4, %5, %cst {dimension_numbers = #tpu.dot_dimension_numbers<[1], [0], [0], [1], [0, 0, 1, 1], [], []>} : vector<8x128xf32>, vector<128x128xf32>, vector<8x128xf32> -> vector<8x128xf32>
    %7 = arith.addf %3, %6 : vector<8x128xf32>
    %c0_6 = arith.constant 0 : index
    %c0_7 = arith.constant 0 : index
    %8 = vector.load %arg7[%c0_6, %c0_7] : memref<8x128xf32, #tpu.memory_space<vmem>>, vector<8x128xf32>
    tpu.vector_store %arg7[%c0_6, %c0_7], %7 {strides = array<i32>} : memref<8x128xf32, #tpu.memory_space<vmem>>, vector<8x128xf32>,
    %c0_i32_8 = arith.constant 0 : i32
    %9 = arith.cmpi eq, %arg2, %c0_i32_8 : i32
    %10 = arith.extui %9 : i1 to i32
    %c0_i32_9 = arith.constant 0 : i32
    %11 = arith.cmpi ne, %10, %c0_i32_9 : i32
    scf.if %11 {
      %c0_10 = arith.constant 0 : index
      %c0_11 = arith.constant 0 : index
      %12 = vector.load %arg5[%c0_10, %c0_11] : memref<8x128xf32, #tpu.memory_space<vmem>>, vector<8x128xf32>
      %c0_12 = arith.constant 0 : index
      %c0_13 = arith.constant 0 : index
      %13 = vector.load %arg6[%c0_12, %c0_13] : memref<1x128xf32, #tpu.memory_space<vmem>>, vector<1x128xf32>
      %c0_14 = arith.constant 0 : index
      %c0_15 = arith.constant 0 : index
      %14 = vector.load %arg7[%c0_14, %c0_15] : memref<8x128xf32, #tpu.memory_space<vmem>>, vector<8x128xf32>
      %15 = arith.subf %14, %12 : vector<8x128xf32>
      %16 = vector.broadcast %13 : vector<1x128xf32> to vector<8x128xf32>
      %17 = arith.mulf %15, %16 : vector<8x128xf32>
      %18 = arith.addf %12, %17 : vector<8x128xf32>
      %c0_16 = arith.constant 0 : index
      %c0_17 = arith.constant 0 : index
      %19 = vector.load %arg7[%c0_16, %c0_17] : memref<8x128xf32, #tpu.memory_space<vmem>>, vector<8x128xf32>
      tpu.vector_store %arg7[%c0_16, %c0_17], %18 {strides = array<i32>} : memref<8x128xf32, #tpu.memory_space<vmem>>, vector<8x128xf32>,
    } else {
    }
    return
  }
  func.func @transform_0(%arg0: i32, %arg1: i32, %arg2: i32) -> (i32, i32) {
    %c0_i32 = arith.constant 0 : i32
    return %arg0, %arg2 : i32, i32
  }
  func.func @transform_1(%arg0: i32, %arg1: i32, %arg2: i32) -> (i32, i32) {
    %c0_i32 = arith.constant 0 : i32
    return %arg2, %arg1 : i32, i32
  }
  func.func @transform_2(%arg0: i32, %arg1: i32, %arg2: i32) -> (i32, i32) {
    %c0_i32 = arith.constant 0 : i32
    return %arg0, %arg1 : i32, i32
  }
  func.func @transform_3(%arg0: i32, %arg1: i32, %arg2: i32) -> (i32, i32) {
    %c0_i32 = arith.constant 0 : i32
    %c0_i32_0 = arith.constant 0 : i32
    return %c0_i32, %arg1 : i32, i32
  }
  func.func @transform_4(%arg0: i32, %arg1: i32, %arg2: i32) -> (i32, i32) {
    %c0_i32 = arith.constant 0 : i32
    return %arg0, %arg1 : i32, i32
  }
}

</mosaic_0001>

<bundles_post_ra>
// kernel: tpu_custom_call.1
= control target key start
LH: loop header
LB: loop body
LE: loop exit
PB: predicated region body
PF: predicated region fallthrough
CT: control target
= control target key end

     0   :  { %9 = vsyncpa [#allocation3], 0  ;;  %s403_s0 = inlined_call_operand.vmem [shape: f32[8,128], index: 0, kind: input, shape index: {}]   ;;  %s404_s1 = inlined_call_operand.hbm [shape: f32[128,128], index: 1, kind: input, shape index: {}]   ;;  %s405_s2 = inlined_call_operand.hbm [shape: f32[8,128], index: 2, kind: input, shape index: {}, may-alias: {2,4}]   ;;  %s406_s3 = inlined_call_operand.vmem [shape: f32[1,128], index: 3, kind: input, shape index: {}]   ;;  %s407_s4 = inlined_call_operand.hbm [shape: f32[8,128], index: 4, kind: output, shape index: {}, may-alias: {2,4}]  }
   0x1   :  { %10 = vsyncpa [#allocation6], 0 }
   0x2   :  { %11 = vsyncpa [#allocation4], 0  ;;  %s328_s15 = smov [#allocation2]   ;;  %s256_s19 = scalar_lea.hbm %s404_s1, 2048 }
   0x3   :  { %s19_s16 = sshll.u32 %s328_s15, 4  ;;  %p257_p0 = scmp.ne.s32.totalorder %s404_s1, %s256_s19  ;;  %s20_s16 = int_to_ptr.vmem [resolvable:$true] %s19_s16 }
   0x4   :  { %p260_p1 = scmp.lt.u32.totalorder %s256_s19, %s404_s1 }
   0x6   :  { %p262_p2 = pnand %p260_p1, %p257_p0 }
   0x8   :  { %265 = shalt.err (!%p262_p2)
}
   0x9   :  { %s266_s24 = scalar_lea.vmem %s20_s16, 2048  ;;  %p271_p4 = scmp.lt.s32.totalorder %s20_s16, %s20_s16 }
   0xa   :  { %p267_p3 = scmp.ne.s32.totalorder %s20_s16, %s266_s24  ;;  %p272_p5 = scmp.lt.s32.totalorder %s266_s24, %s266_s24 }
   0xc   :  { %p273_p6 = por %p272_p5, %p271_p4 }
   0xe   :  { %p274_p7 = pnand %p273_p6, %p267_p3 }
  0x10   :  { %277 = shalt.err (!%p274_p7)
}
  0x11   :  { %s329_s25 = smov 128   ;;  %s330_s26 = smov 8  }
  0x12   :  { %25 = dma.hbm_to_vmem [thread:$0]  %s404_s1, 2048, %s20_s16, [#allocation3], %s329_s25, %s329_s25, %s330_s26  }
  0x13   :  { %s331_s29 = smov [#allocation5]   ;;  %s278_s7 = scalar_lea.hbm %s405_s2, 128 }
  0x14   :  { %s32_s30 = sshll.u32 %s331_s29, 4  ;;  %p279_p8 = scmp.ne.s32.totalorder %s405_s2, %s278_s7  ;;  %s33_s30 = int_to_ptr.vmem [resolvable:$true] %s32_s30 }
  0x15   :  { %p282_p9 = scmp.lt.u32.totalorder %s278_s7, %s405_s2 }
  0x17   :  { %p284_p10 = pnand %p282_p9, %p279_p8 }
  0x19   :  { %287 = shalt.err (!%p284_p10)
}
  0x1a   :  { %s288_s12 = scalar_lea.vmem %s33_s30, 128  ;;  %p293_p12 = scmp.lt.s32.totalorder %s33_s30, %s33_s30 }
  0x1b   :  { %p289_p11 = scmp.ne.s32.totalorder %s33_s30, %s288_s12  ;;  %p294_p13 = scmp.lt.s32.totalorder %s288_s12, %s288_s12 }
  0x1d   :  { %p295_p0 = por %p294_p13, %p293_p12 }
  0x1f   :  { %p296_p1 = pnand %p295_p0, %p289_p11 }
  0x21   :  { %299 = shalt.err (!%p296_p1)
}
  0x22   :  { %35 = dma.hbm_to_vmem [thread:$0]  %s405_s2, 128, %s33_s30, [#allocation6]  }
  0x23   :  { %322 = dma.done.wait [#allocation3], 2048  }
  0x24   :  { %323 = vsyncadd [#allocation3], 4294965248 }
  0x25   :  { %324 = dma.done.wait [#allocation6], 128  }
  0x26   :  { %325 = vsyncadd [#allocation6], 4294967168  ;;  %v332_v0 = vmov 0.0|0.0   ;;  %vm333_vm0 = vmmov 0   ;;  %v334_v1 = vmov 0.0   ;;  %v51_v2 = vld [vmem:[#allocation2] sm:$0xff] }
  0x27   :  { %224 = vmatprep.subr.bf16.mxu0 %v332_v0  ;;  %221 = vmatprep.mubr.msk.f32.mxu0 %vm333_vm0, %v334_v1  ;;  %v52_v3 = vld [vmem:[#allocation2 + $0x8] sm:$0xff]  ;;  %v53_v4 = vld [vmem:[#allocation2 + $0x10] sm:$0xff]  ;;  %v54_v6 = vld [vmem:[#allocation2 + $0x18] sm:$0xff]  ;;  %s335_s17 = smov [#allocation7]  }
  0x28   :  { %v225_v5 = vpack.c.bf16 %v52_v3, %v51_v2  ;;  %v228_v7 = vpack.c.bf16 %v54_v6, %v53_v4  ;;  %v55_v8 = vld [vmem:[#allocation2 + $0x20] sm:$0xff]  ;;  %v56_v9 = vld [vmem:[#allocation2 + $0x28] sm:$0xff]  ;;  %v57_v11 = vld [vmem:[#allocation2 + $0x30] sm:$0xff]  ;;  %s161_s18 = sshll.u32 %s335_s17, 4  ;;  %s162_s18 = int_to_ptr.vmem [resolvable:$true] %s161_s18 }
  0x29   :  { %v231_v10 = vpack.c.bf16 %v56_v9, %v55_v8  ;;  %v58_v12 = vld [vmem:[#allocation2 + $0x38] sm:$0xff]  ;;  %v59_v14 = vld [vmem:[#allocation2 + $0x40] sm:$0xff]  ;;  %v60_v15 = vld [vmem:[#allocation2 + $0x48] sm:$0xff]  ;;  %s300_s19 = scalar_lea.vmem %s162_s18, 128  ;;  %p305_p3 = scmp.lt.s32.totalorder %s162_s18, %s162_s18 }
  0x2a   :  { %226 = vmatpush3.bf16.msra.mxu0 %v225_v5  ;;  %v234_v13 = vpack.c.bf16 %v58_v12, %v57_v11  ;;  %v237_v16 = vpack.c.bf16 %v60_v15, %v59_v14  ;;  %v61_v17 = vld [vmem:[#allocation2 + $0x50] sm:$0xff]  ;;  %v62_v18 = vld [vmem:[#allocation2 + $0x58] sm:$0xff]  ;;  %v63_v20 = vld [vmem:[#allocation2 + $0x60] sm:$0xff]  ;;  %p301_p2 = scmp.ne.s32.totalorder %s162_s18, %s300_s19  ;;  %p306_p4 = scmp.lt.s32.totalorder %s300_s19, %s300_s19 }
  0x2b   :  { %227 = vmatprep.subr.bf16.mxu0 %v332_v0  ;;  %v240_v19 = vpack.c.bf16 %v62_v18, %v61_v17  ;;  %v64_v21 = vld [vmem:[#allocation2 + $0x68] sm:$0xff]  ;;  %v65_v23 = vld [vmem:[#allocation2 + $0x70] sm:$0xff]  ;;  %v66_v24 = vld [vmem:[#allocation2 + $0x78] sm:$0xff] }
  0x2c   :  { %v243_v22 = vpack.c.bf16 %v64_v21, %v63_v20  ;;  %v246_v25 = vpack.c.bf16 %v66_v24, %v65_v23  ;;  %v50_v26 = vld [vmem:[%s403_s0] sm:$0xff]  ;;  %p307_p5 = por %p306_p4, %p305_p3 }
  0x2d   :  { %v142_v28 = vld [vmem:[#allocation5] sm:$0xff] }
  0x2e   :  { %229 = vmatpush3.bf16.msra.mxu0 %v228_v7  ;;  %v171_v30 = vld [vmem:[%s406_s3] ss:$0 sm:$0xff]  ;;  %p308_p6 = pnand %p307_p5, %p301_p2 }
  0x2f   :  { %230 = vmatprep.subr.bf16.mxu0 %v332_v0 }
  0x32   :  { %232 = vmatpush3.bf16.msra.mxu0 %v231_v10 }
  0x33   :  { %233 = vmatprep.subr.bf16.mxu0 %v332_v0 }
  0x36   :  { %235 = vmatpush3.bf16.msra.mxu0 %v234_v13 }
  0x37   :  { %236 = vmatprep.subr.bf16.mxu0 %v332_v0 }
  0x3a   :  { %238 = vmatpush3.bf16.msra.mxu0 %v237_v16 }
  0x3b   :  { %239 = vmatprep.subr.bf16.mxu0 %v332_v0 }
  0x3e   :  { %241 = vmatpush3.bf16.msra.mxu0 %v240_v19 }
  0x3f   :  { %242 = vmatprep.subr.bf16.mxu0 %v332_v0 }
  0x42   :  { %244 = vmatpush3.bf16.msra.mxu0 %v243_v22 }
  0x43   :  { %245 = vmatprep.subr.bf16.mxu0 %v332_v0 }
  0x46   :  { %247 = vmatpush3.bf16.msra.mxu0 %v246_v25 }
  0x49   :  { %222 = vmatmul.mubr.f32.vlgmr.msra.gmra.mrb[0].mxu0 %v50_v26 }
 0x11c   :  { %v133_v27 = vpop.f32.mrb[0].mxu0 }
 0x11d   :  { %v223_v29 = vpop.f32.mrb[1].mxu0  ;;  %v145_v31 = vsub.f32 %v133_v27, %v142_v28 }
 0x11f   :  { %v152_v32 = vmul.f32 %v171_v30, %v145_v31 }
 0x121   :  { %v153_v33 = vadd.f32 %v152_v32, %v142_v28 }
 0x123   :  { %154 = vst [vmem:[#allocation7] sm:$0xff] %v153_v33 }
 0x124   :  { %311 = shalt.err (!%p308_p6)
}
 0x125   :  { %s312_s21 = scalar_lea.hbm %s407_s4, 128 }
 0x126   :  { %p313_p7 = scmp.ne.s32.totalorder %s407_s4, %s312_s21  ;;  %p316_p8 = scmp.lt.u32.totalorder %s312_s21, %s407_s4 }
 0x128   :  { %p318_p9 = pnand %p316_p8, %p313_p7 }
 0x12a   :  { %321 = shalt.err (!%p318_p9)
}
 0x12b   :  { %164 = dma.vmem_to_hbm [thread:$0]  %s162_s18, 128, %s407_s4, [#allocation4]  }
 0x12c   :  { %326 = dma.done.wait [#allocation4], 128  }
 0x12d   :  { %327 = vsyncadd [#allocation4], 4294967168 }
 0x12e   :  { %168 = vsyncpa [#allocation3], 1 }
 0x12f   :  { %169 = vsyncpa [#allocation6], 1 }
 0x130   :  { %170 = vsyncpa [#allocation4], 1 }

</bundles_post_ra>
